<compile_context>
chip_gen: v7x
topology: tpu7x:2x2x1
jax: 0.10.0
libtpu: 0.0.40
codegen_flags: <defaults>
</compile_context>

<pallas_src>
import jax
import jax.numpy as jnp
from jax.experimental import pallas as pl
from jax.experimental.pallas import tpu as pltpu


# ----------------------------------------------------------------------------
# Zero-cost path: the exact translation of IdentityOperation.forward.
# ----------------------------------------------------------------------------
def identity_op(x: jax.Array) -> jax.Array:
    """Faithful (and free) IdentityOperation.forward: return x unchanged."""
    return x


# ----------------------------------------------------------------------------
# Materialized-copy path (Pallas kernel).
# ----------------------------------------------------------------------------
def _copy_kernel(x_ref, o_ref):
    # Pass-through of the current VMEM tile (lane-dense unmasked vst).
    o_ref[...] = x_ref[...]


_BLOCK_BYTES_CAP = 4 * 1024 * 1024     # per-block cap in BYTES (dtype-agnostic)
_VMEM_LIMIT_BYTES = 40 * 1024 * 1024   # > v5e 16 MiB scoped default, < v7x 64 MiB physical


def _lane_dense_2d(x: jax.Array):
    """Return a lane-dense (rows, lane) 2-D view of x (lane % 128 == 0), or
    None if impossible without padding (neither the trailing dim nor the total
    size is a multiple of 128)."""
    n = x.size
    if x.ndim >= 2 and x.shape[-1] % 128 == 0:
        lane = x.shape[-1]
        return x.reshape(n // lane, lane)      # free for contiguous row-major
    if n % 128 == 0:
        lane = 128
        for cand in (4096, 2048, 1024, 512, 256):
            if cand <= n and n % cand == 0:
                lane = cand
                break
        return x.reshape(n // lane, lane)
    return None


def _row_tile(rows: int, lane: int, itemsize: int) -> int:
    """Largest row tile (multiple of 32, >= 8) whose block stays near the byte cap."""
    block_elems_cap = max(_BLOCK_BYTES_CAP // itemsize, lane)
    tr = block_elems_cap // lane
    if tr >= rows:
        return rows                             # single full-extent block along rows
    tr = max(32, (tr // 32) * 32)               # mult of 32 covers f32/bf16/int8 sublane tiling
    return min(tr, rows)


def identity_copy_pallas(x: jax.Array) -> jax.Array:
    """Materialized identity copy implemented as a tiled Pallas TPU kernel."""
    if x.size == 0:
        return x

    x2 = _lane_dense_2d(x)
    if x2 is None:
        # Total size not 128-aligned: a pad + kernel + slice round-trip would
        # cost ~3x the bytes of a plain copy, so let XLA emit the plain
        # (2x-bytes roofline) copy instead.
        # TODO(synk): optional Pallas aligned-prefix copy + tiny tail patch.
        return jnp.copy(x)

    rows, lane = x2.shape
    tr = _row_tile(rows, lane, x2.dtype.itemsize)
    grid = (pl.cdiv(rows, tr),)
    bytes_total = x2.size * x2.dtype.itemsize

    out2 = pl.pallas_call(
        _copy_kernel,
        out_shape=jax.ShapeDtypeStruct((rows, lane), x.dtype),
        grid=grid,
        in_specs=[pl.BlockSpec((tr, lane), lambda i: (i, 0))],
        out_specs=pl.BlockSpec((tr, lane), lambda i: (i, 0)),
        compiler_params=pltpu.CompilerParams(
            dimension_semantics=("parallel",),
            vmem_limit_bytes=_VMEM_LIMIT_BYTES,
        ),
        cost_estimate=pl.CostEstimate(
            flops=0, transcendentals=0, bytes_accessed=2 * bytes_total
        ),
    )(x2)

    return out2.reshape(x.shape)


if __name__ == "__main__":
    key = jax.random.PRNGKey(0)

    # NCHW input consistent with a conv-style NAS operation.
    x = jax.random.normal(key, (2, 4, 16, 16), dtype=jnp.float32)

    # Zero-cost path (the semantically exact translation of the module).
    y_fast = identity_op(x)
    assert y_fast is x

    # Pallas copy path (flat 128-aligned view: 2048 elems -> (1, 2048) block).
    y = jax.block_until_ready(identity_copy_pallas(x))
    assert y.shape == x.shape and y.dtype == x.dtype
    assert bool(jnp.all(y == x)), "identity output mismatch (f32 path)"

    # bf16 input whose trailing dim is already a multiple of 128: exercises the
    # direct 2-D collapse path and the byte-based block sizing.
    xb = jax.random.normal(key, (2, 8, 128), dtype=jnp.bfloat16)
    yb = jax.block_until_ready(identity_copy_pallas(xb))
    assert yb.shape == xb.shape and yb.dtype == xb.dtype
    assert bool(jnp.all(yb == xb)), "identity output mismatch (bf16 path)"

    # Non-128-aligned total size: plain-copy fallback (no pad/slice round-trip).
    xo = jax.random.normal(key, (2, 3, 5, 7), dtype=jnp.float32)
    yo = jax.block_until_ready(identity_copy_pallas(xo))
    assert yo.shape == xo.shape and bool(jnp.all(yo == xo)), "identity output mismatch (fallback path)"

    print("KERNEL_OK")
</pallas_src>

<mosaic_0001>
module attributes {stable_mosaic.version = 11 : i64} {
  func.func @_copy_kernel(%arg0: i32, %arg1: memref<1x2048xf32, #tpu.memory_space<vmem>>, %arg2: memref<1x2048xf32, #tpu.memory_space<vmem>>) attributes {dimension_semantics = [#tpu.dimension_semantics<parallel>], iteration_bounds = array<i64: 1>, scalar_prefetch = 0 : i64, scratch_operands = 0 : i64, tpu.core_type = #tpu.core_type<tc>, window_params = [{transform_indices = @transform_0, window_bounds = array<i64: 1, 2048>}, {transform_indices = @transform_1, window_bounds = array<i64: 1, 2048>}]} {
    %c0 = arith.constant 0 : index
    %c0_0 = arith.constant 0 : index
    %0 = vector.load %arg1[%c0, %c0_0] : memref<1x2048xf32, #tpu.memory_space<vmem>>, vector<1x2048xf32>
    %c0_1 = arith.constant 0 : index
    %c0_2 = arith.constant 0 : index
    %1 = vector.load %arg2[%c0_1, %c0_2] : memref<1x2048xf32, #tpu.memory_space<vmem>>, vector<1x2048xf32>
    tpu.vector_store %arg2[%c0_1, %c0_2], %0 {strides = array<i32>} : memref<1x2048xf32, #tpu.memory_space<vmem>>, vector<1x2048xf32>,
    return
  }
  func.func @transform_0(%arg0: i32) -> (i32, i32) {
    %c0_i32 = arith.constant 0 : i32
    %c0_i32_0 = arith.constant 0 : i32
    return %arg0, %c0_i32 : i32, i32
  }
  func.func @transform_1(%arg0: i32) -> (i32, i32) {
    %c0_i32 = arith.constant 0 : i32
    %c0_i32_0 = arith.constant 0 : i32
    return %arg0, %c0_i32 : i32, i32
  }
}

</mosaic_0001>

<bundles_post_ra>
// kernel: tpu_custom_call.1
= control target key start
LH: loop header
LB: loop body
LE: loop exit
PB: predicated region body
PF: predicated region fallthrough
CT: control target
= control target key end

     0   :  { %6 = vsyncpa [#allocation3], 0  ;;  %s126_s0 = inlined_call_operand.hbm [shape: f32[1,2048], index: 0, kind: input, shape index: {}]   ;;  %s127_s1 = inlined_call_operand.hbm [shape: f32[1,2048], index: 1, kind: output, shape index: {}]  }
   0x1   :  { %7 = vsyncpa [#allocation4], 0  ;;  %s90_s6 = smov [#allocation2]   ;;  %s42_s10 = scalar_lea.hbm %s126_s0, 256 }
   0x2   :  { %s14_s7 = sshll.u32 %s90_s6, 4  ;;  %p43_p0 = scmp.ne.s32.totalorder %s126_s0, %s42_s10  ;;  %s15_s7 = int_to_ptr.vmem [resolvable:$true] %s14_s7 }
   0x3   :  { %p46_p1 = scmp.lt.u32.totalorder %s42_s10, %s126_s0 }
   0x5   :  { %p48_p2 = pnand %p46_p1, %p43_p0 }
   0x7   :  { %51 = shalt.err (!%p48_p2)
}
   0x8   :  { %s52_s15 = scalar_lea.vmem %s15_s7, 256  ;;  %p57_p4 = scmp.lt.s32.totalorder %s15_s7, %s15_s7 }
   0x9   :  { %p53_p3 = scmp.ne.s32.totalorder %s15_s7, %s52_s15  ;;  %p58_p5 = scmp.lt.s32.totalorder %s52_s15, %s52_s15 }
   0xb   :  { %p59_p6 = por %p58_p5, %p57_p4 }
   0xd   :  { %p60_p7 = pnand %p59_p6, %p53_p3 }
   0xf   :  { %63 = shalt.err (!%p60_p7)
}
  0x10   :  { %17 = dma.hbm_to_vmem [thread:$0]  %s126_s0, 256, %s15_s7, [#allocation3]  }
  0x11   :  { %86 = dma.done.wait [#allocation3], 256  }
  0x12   :  { %87 = vsyncadd [#allocation3], 4294967040  ;;  %s91_s18 = smov [#allocation5]   ;;  %v21_v0 = vld [vmem:[#allocation2] sm:$0xff]  ;;  %v22_v1 = vld [vmem:[#allocation2 + $0x8] sm:$0xff] }
  0x13   :  { %s31_s19 = sshll.u32 %s91_s18, 4  ;;  %23 = vst [vmem:[#allocation5] sm:$0xff] %v21_v0  ;;  %24 = vst [vmem:[#allocation5 + $0x8] sm:$0xff] %v22_v1  ;;  %s32_s19 = int_to_ptr.vmem [resolvable:$true] %s31_s19 }
  0x14   :  { %s64_s20 = scalar_lea.vmem %s32_s19, 256  ;;  %p69_p9 = scmp.lt.s32.totalorder %s32_s19, %s32_s19 }
  0x15   :  { %p65_p8 = scmp.ne.s32.totalorder %s32_s19, %s64_s20  ;;  %p70_p10 = scmp.lt.s32.totalorder %s64_s20, %s64_s20 }
  0x17   :  { %p71_p11 = por %p70_p10, %p69_p9 }
  0x19   :  { %p72_p12 = pnand %p71_p11, %p65_p8 }
  0x1b   :  { %75 = shalt.err (!%p72_p12)
}
  0x1c   :  { %s76_s0 = scalar_lea.hbm %s127_s1, 256 }
  0x1d   :  { %p77_p13 = scmp.ne.s32.totalorder %s127_s1, %s76_s0  ;;  %p80_p0 = scmp.lt.u32.totalorder %s76_s0, %s127_s1 }
  0x1f   :  { %p82_p1 = pnand %p80_p0, %p77_p13 }
  0x21   :  { %85 = shalt.err (!%p82_p1)
}
  0x22   :  { %34 = dma.vmem_to_hbm [thread:$0]  %s32_s19, 256, %s127_s1, [#allocation4]  }
  0x23   :  { %88 = dma.done.wait [#allocation4], 256  }
  0x24   :  { %89 = vsyncadd [#allocation4], 4294967040 }
  0x25   :  { %38 = vsyncpa [#allocation3], 1 }
  0x26   :  { %39 = vsyncpa [#allocation4], 1 }

</bundles_post_ra>
